<compile_context>
chip_gen: v7x
topology: tpu7x:2x2x1
jax: 0.10.0
libtpu: 0.0.40
codegen_flags: <defaults>
</compile_context>

<pallas_src>
import functools

import jax
import jax.numpy as jnp
from jax.experimental import pallas as pl
from jax.experimental.pallas import tpu as pltpu

HALF_LOG_2PI = 0.5 * float(jnp.log(2.0 * jnp.pi))


def _round_up(x, m):
    return ((x + m - 1) // m) * m


def _cdiv(a, b):
    return -(-a // b)


# --------------------------------------------------------------------------
# Kernel: one fused forward pass over a batch tile.
# --------------------------------------------------------------------------
def policy_act_kernel(x_ref, w1_ref, b1_ref, w2_ref, b2_ref, wh_ref, bh_ref,
                      out_ref, *, compute_dtype):
    cd = compute_dtype
    f32 = jnp.float32

    x = x_ref[...]
    if x.dtype != cd:          # free if the producer already emits compute_dtype
        x = x.astype(cd)

    # Layer 1 (fused actor|critic): [TB, OBS] @ [OBS, 2H] -> [TB, 2H]
    z1 = jnp.dot(x, w1_ref[...], preferred_element_type=f32) + b1_ref[...]
    # tanh in compute dtype: bf16 is EUP-native on v6e/v7x; upcast on v5e.
    h1 = jnp.tanh(z1.astype(cd))

    if len(w2_ref.shape) == 2:
        # Small hidden (2H <= 128): block-diagonal fused layer 2 + fused head.
        z2 = jnp.dot(h1, w2_ref[...], preferred_element_type=f32) + b2_ref[...]
        h2 = jnp.tanh(z2.astype(cd))
        out = jnp.dot(h2, wh_ref[...], preferred_element_type=f32) + bh_ref[...]
    else:
        # Larger hidden: two H x H dots (w2_ref / wh_ref are stacked [2,H,*]),
        # avoiding the 2x MAC / 2x VMEM cost of the block-diagonal trick.
        H = w2_ref.shape[1]
        za = jnp.dot(h1[:, :H], w2_ref[0], preferred_element_type=f32) + b2_ref[:, :H]
        zc = jnp.dot(h1[:, H:], w2_ref[1], preferred_element_type=f32) + b2_ref[:, H:]
        h2a = jnp.tanh(za.astype(cd))
        h2c = jnp.tanh(zc.astype(cd))
        out = (jnp.dot(h2a, wh_ref[0], preferred_element_type=f32)
               + jnp.dot(h2c, wh_ref[1], preferred_element_type=f32)
               + bh_ref[...])

    # Narrow output slab: lane 0 = value, lanes 1..A = action mean, rest zero.
    out_ref[...] = out


# --------------------------------------------------------------------------
# Parameter packing: 14 small tensors -> 6 resident slabs.
# --------------------------------------------------------------------------
def pack_params(params, head_out, compute_dtype, fuse_layer2):
    H = params["wa1"].shape[1]
    A = params["wm"].shape[1]
    cd = compute_dtype
    f32 = jnp.float32

    # Layer 1: actor columns first, then critic columns.
    W1 = jnp.concatenate([params["wa1"], params["wc1"]], axis=1).astype(cd)
    b1 = jnp.concatenate([params["ba1"], params["bc1"]], axis=1).astype(f32)
    b2 = jnp.concatenate([params["ba2"], params["bc2"]], axis=1).astype(f32)
    bh = (jnp.zeros((1, head_out), f32)
          .at[:, 0:1].set(params["bv"])
          .at[:, 1:1 + A].set(params["bm"]))

    if fuse_layer2:
        W2 = (jnp.zeros((2 * H, 2 * H), f32)
              .at[:H, :H].set(params["wa2"])
              .at[H:, H:].set(params["wc2"])).astype(cd)
        Wh = (jnp.zeros((2 * H, head_out), f32)
              .at[:H, 1:1 + A].set(params["wm"])
              .at[H:, 0:1].set(params["wv"])).astype(cd)
    else:
        W2 = jnp.stack([params["wa2"], params["wc2"]], axis=0).astype(cd)
        Wh = jnp.stack(
            [jnp.zeros((H, head_out), f32).at[:, 1:1 + A].set(params["wm"]),
             jnp.zeros((H, head_out), f32).at[:, 0:1].set(params["wv"])],
            axis=0).astype(cd)
    return W1, b1, W2, b2, Wh, bh


# --------------------------------------------------------------------------
# Wrapper: Policy.act(inputs, deterministic=True)
#   -> (value [B,1], action [B,A], action_log_probs [B,1], rnn_hxs)
# --------------------------------------------------------------------------
def policy_act(x, params, rnn_hxs=None, *, deterministic=True,
               batch_tile=1024, compute_dtype=jnp.bfloat16):
    if not deterministic:
        # TODO(synk): stochastic dist.sample() path (needs per-call RNG) and the
        # recurrent GRU branch of MLPBase are not implemented.
        raise NotImplementedError("only the deterministic, non-recurrent act() path is implemented")

    B, OBS = x.shape
    H = params["wa1"].shape[1]
    A = params["wm"].shape[1]
    H2 = 2 * H
    # Narrow lane output (last dim == full array dim keeps the BlockSpec legal);
    # writeback is 16x smaller than a 128-lane-padded f32 slab.
    head_out = _round_up(1 + A, 8)

    # Block-diagonal layer-2 fusion only while 2H fits one MXU tile on all gens.
    fuse_layer2 = H2 <= 128

    W1, b1, W2, b2, Wh, bh = pack_params(params, head_out, compute_dtype, fuse_layer2)
    weights = (W1, b1, W2, b2, Wh, bh)

    # Batch tile: large default amortizes per-grid-step overhead; always a
    # multiple of 8.  If the batch supports >= 4 tiles of >= 256 rows, force
    # >= 4 grid steps so the parallel axis can shard across v7x's 2 TCs.
    TB = _round_up(max(1, min(batch_tile, B)), 8)
    tb_for_4_steps = _round_up(_cdiv(B, 4), 8)
    if tb_for_4_steps >= 256:
        TB = min(TB, tb_for_4_steps)
    Bp = _round_up(B, TB)
    if Bp != B:
        x = jnp.pad(x, ((0, Bp - B), (0, 0)))

    # Conservative VMEM estimate: double-buffered x/out tiles + f32/bf16
    # intermediates + double-buffered resident weights.
    per_row_bytes = 2 * 4 * OBS + 2 * 4 * head_out + 3 * 6 * H2
    weight_bytes = sum(int(w.size) * w.dtype.itemsize for w in weights)
    vmem_est = TB * per_row_bytes + 2 * weight_bytes + (1 << 20)
    cp_kwargs = dict(dimension_semantics=("parallel",))
    if vmem_est > 12 * 1024 * 1024:   # approaching v5e's 16 MiB scoped default
        cp_kwargs["vmem_limit_bytes"] = int(min(2 * vmem_est, 60 * 1024 * 1024))
    compiler_params = pltpu.CompilerParams(**cp_kwargs)

    l2_macs = H2 * H2 if fuse_layer2 else 2 * H * H
    cost = pl.CostEstimate(
        flops=int(2 * Bp * (OBS * H2 + l2_macs + H2 * head_out)),
        transcendentals=int(Bp * 2 * H2),
        bytes_accessed=int(Bp * (OBS * x.dtype.itemsize + head_out * 4) + weight_bytes),
    )

    def _resident(shape):
        nd = len(shape)
        return pl.BlockSpec(shape, lambda i, _nd=nd: (0,) * _nd)

    out = pl.pallas_call(
        functools.partial(policy_act_kernel, compute_dtype=compute_dtype),
        out_shape=jax.ShapeDtypeStruct((Bp, head_out), jnp.float32),
        grid=(Bp // TB,),
        in_specs=[pl.BlockSpec((TB, OBS), lambda i: (i, 0))]
                 + [_resident(w.shape) for w in weights],
        out_specs=pl.BlockSpec((TB, head_out), lambda i: (i, 0)),
        compiler_params=compiler_params,
        cost_estimate=cost,
    )(x, *weights)

    value = out[:B, 0:1]
    action = out[:B, 1:1 + A]

    # Deterministic: action == mean -> the Gaussian quadratic term vanishes and
    # log_probs is a batch constant.
    # TODO(synk): restore the full per-dim Normal log_prob (and entropy) if a
    # stochastic sample()/evaluate_actions path is added.
    logp = jnp.full((B, 1), -jnp.sum(params["logstd"]) - A * HALF_LOG_2PI,
                    jnp.float32)
    return value, action, logp, rnn_hxs


# --------------------------------------------------------------------------
# Synthetic parameters (stand-in for the orthogonal init of the PyTorch model).
# --------------------------------------------------------------------------
def make_params(key, obs_dim, hidden, act_dim, scale=0.3):
    ks = jax.random.split(key, 13)
    s = lambda k, shp: scale * jax.random.normal(k, shp, jnp.float32)
    return {
        "wa1": s(ks[0], (obs_dim, hidden)), "ba1": s(ks[1], (1, hidden)),
        "wa2": s(ks[2], (hidden, hidden)),  "ba2": s(ks[3], (1, hidden)),
        "wc1": s(ks[4], (obs_dim, hidden)), "bc1": s(ks[5], (1, hidden)),
        "wc2": s(ks[6], (hidden, hidden)),  "bc2": s(ks[7], (1, hidden)),
        "wv":  s(ks[8], (hidden, 1)),       "bv":  s(ks[9], (1, 1)),
        "wm":  s(ks[10], (hidden, act_dim)), "bm": s(ks[11], (1, act_dim)),
        "logstd": 0.1 * jax.random.normal(ks[12], (1, act_dim), jnp.float32),
    }


# Pure-f32 reference (true-precision parity check).
def ref_act_f32(x, params):
    f32 = jnp.float32
    hp = jax.lax.Precision.HIGHEST
    lin = lambda h, w, b: jnp.dot(h.astype(f32), params[w].astype(f32),
                                  precision=hp) + params[b]
    ha = jnp.tanh(lin(x, "wa1", "ba1")); ha = jnp.tanh(lin(ha, "wa2", "ba2"))
    hc = jnp.tanh(lin(x, "wc1", "bc1")); hc = jnp.tanh(lin(hc, "wc2", "bc2"))
    value, mean = lin(hc, "wv", "bv"), lin(ha, "wm", "bm")
    A = mean.shape[-1]
    logp = jnp.full((x.shape[0], 1),
                    -jnp.sum(params["logstd"]) - A * HALF_LOG_2PI, f32)
    return value, mean, logp


# Reference matching the kernel's numeric recipe (bf16 dots + bf16 tanh).
def ref_act_match(x, params, compute_dtype=jnp.bfloat16):
    cd, f32 = compute_dtype, jnp.float32
    lin = lambda h, w, b: (jnp.dot(h.astype(cd), params[w].astype(cd),
                                   preferred_element_type=f32) + params[b])
    act = lambda z: jnp.tanh(z.astype(cd))
    ha = act(lin(x, "wa1", "ba1")); ha = act(lin(ha, "wa2", "ba2"))
    hc = act(lin(x, "wc1", "bc1")); hc = act(lin(hc, "wc2", "bc2"))
    value, mean = lin(hc, "wv", "bv"), lin(ha, "wm", "bm")
    A = mean.shape[-1]
    logp = jnp.full((x.shape[0], 1),
                    -jnp.sum(params["logstd"]) - A * HALF_LOG_2PI, f32)
    return value, mean, logp


if __name__ == "__main__":
    key = jax.random.PRNGKey(0)
    k1, k2, k3, k4 = jax.random.split(key, 4)

    # --- Config 1: tiny shapes, fused block-diagonal layer-2 path -----------
    B, OBS, H, A = 8, 16, 32, 4
    x = jax.random.normal(k1, (B, OBS), jnp.float32)
    params = make_params(k2, OBS, H, A, scale=0.3)

    value, action, logp, _ = policy_act(x, params)
    jax.block_until_ready((value, action, logp))
    assert value.shape == (B, 1) and action.shape == (B, A) and logp.shape == (B, 1)

    vm, am, lm = ref_act_match(x, params)
    vf, af, lf = ref_act_f32(x, params)
    # Tolerances account for bf16 MXU inputs + bf16 EUP tanh (impl-ULP level).
    assert jnp.allclose(value, vm, atol=5e-2), jnp.max(jnp.abs(value - vm))
    assert jnp.allclose(action, am, atol=5e-2), jnp.max(jnp.abs(action - am))
    assert jnp.allclose(value, vf, atol=1e-1), jnp.max(jnp.abs(value - vf))
    assert jnp.allclose(action, af, atol=1e-1), jnp.max(jnp.abs(action - af))
    assert jnp.allclose(logp, lf, atol=1e-5)
    assert jnp.allclose(logp, lm, atol=1e-5)

    # --- Config 2: larger hidden (split layer-2 path), ragged batch, grid>1 --
    B2, OBS2, HID2, A2 = 100, 24, 128, 6
    x2 = jax.random.normal(k3, (B2, OBS2), jnp.float32)
    params2 = make_params(k4, OBS2, HID2, A2, scale=0.2)
    # odd batch_tile -> rounded to 40; 3 grid steps; batch padded 100 -> 120.
    v2, a2, l2, _ = policy_act(x2, params2, batch_tile=36)
    jax.block_until_ready((v2, a2, l2))
    assert v2.shape == (B2, 1) and a2.shape == (B2, A2) and l2.shape == (B2, 1)

    vm2, am2, lm2 = ref_act_match(x2, params2)
    assert jnp.allclose(v2, vm2, atol=1e-1), jnp.max(jnp.abs(v2 - vm2))
    assert jnp.allclose(a2, am2, atol=1e-1), jnp.max(jnp.abs(a2 - am2))
    assert jnp.allclose(l2, lm2, atol=1e-5)

    print("KERNEL_OK")
</pallas_src>

<mosaic_0001>
module attributes {stable_mosaic.version = 11 : i64} {
  func.func @policy_act_kernel(%arg0: i32, %arg1: memref<8x16xf32, #tpu.memory_space<vmem>>, %arg2: memref<16x64xbf16, #tpu.memory_space<vmem>>, %arg3: memref<1x64xf32, #tpu.memory_space<vmem>>, %arg4: memref<64x64xbf16, #tpu.memory_space<vmem>>, %arg5: memref<1x64xf32, #tpu.memory_space<vmem>>, %arg6: memref<64x8xbf16, #tpu.memory_space<vmem>>, %arg7: memref<1x8xf32, #tpu.memory_space<vmem>>, %arg8: memref<8x8xf32, #tpu.memory_space<vmem>>) attributes {dimension_semantics = [#tpu.dimension_semantics<parallel>], iteration_bounds = array<i64: 1>, scalar_prefetch = 0 : i64, scratch_operands = 0 : i64, tpu.core_type = #tpu.core_type<tc>, window_params = [{transform_indices = @transform_0, window_bounds = array<i64: 8, 16>}, {pipeline_mode = #tpu.pipeline_mode<synchronous>, transform_indices = @transform_1, window_bounds = array<i64: 16, 64>}, {pipeline_mode = #tpu.pipeline_mode<synchronous>, transform_indices = @transform_2, window_bounds = array<i64: 1, 64>}, {pipeline_mode = #tpu.pipeline_mode<synchronous>, transform_indices = @transform_3, window_bounds = array<i64: 64, 64>}, {pipeline_mode = #tpu.pipeline_mode<synchronous>, transform_indices = @transform_4, window_bounds = array<i64: 1, 64>}, {pipeline_mode = #tpu.pipeline_mode<synchronous>, transform_indices = @transform_5, window_bounds = array<i64: 64, 8>}, {pipeline_mode = #tpu.pipeline_mode<synchronous>, transform_indices = @transform_6, window_bounds = array<i64: 1, 8>}, {transform_indices = @transform_7, window_bounds = array<i64: 8, 8>}]} {
    %c0 = arith.constant 0 : index
    %c0_0 = arith.constant 0 : index
    %0 = vector.load %arg1[%c0, %c0_0] : memref<8x16xf32, #tpu.memory_space<vmem>>, vector<8x16xf32>
    %1 = arith.truncf %0 : vector<8x16xf32> to vector<8x16xbf16>
    %c0_1 = arith.constant 0 : index
    %c0_2 = arith.constant 0 : index
    %2 = vector.load %arg2[%c0_1, %c0_2] : memref<16x64xbf16, #tpu.memory_space<vmem>>, vector<16x64xbf16>
    %cst = arith.constant dense<0.000000e+00> : vector<8x64xf32>
    %3 = tpu.matmul %1, %2, %cst {dimension_numbers = #tpu.dot_dimension_numbers<[1], [0], [0], [1], [0, 0, 1, 1], [], []>} : vector<8x16xbf16>, vector<16x64xbf16>, vector<8x64xf32> -> vector<8x64xf32>
    %c0_3 = arith.constant 0 : index
    %c0_4 = arith.constant 0 : index
    %4 = vector.load %arg3[%c0_3, %c0_4] : memref<1x64xf32, #tpu.memory_space<vmem>>, vector<1x64xf32>
    %5 = vector.broadcast %4 : vector<1x64xf32> to vector<8x64xf32>
    %6 = arith.addf %3, %5 : vector<8x64xf32>
    %7 = arith.truncf %6 : vector<8x64xf32> to vector<8x64xbf16>
    %8 = math.tanh %7 : vector<8x64xbf16>
    %c0_5 = arith.constant 0 : index
    %c0_6 = arith.constant 0 : index
    %9 = vector.load %arg4[%c0_5, %c0_6] : memref<64x64xbf16, #tpu.memory_space<vmem>>, vector<64x64xbf16>
    %cst_7 = arith.constant dense<0.000000e+00> : vector<8x64xf32>
    %10 = tpu.matmul %8, %9, %cst_7 {dimension_numbers = #tpu.dot_dimension_numbers<[1], [0], [0], [1], [0, 0, 1, 1], [], []>} : vector<8x64xbf16>, vector<64x64xbf16>, vector<8x64xf32> -> vector<8x64xf32>
    %c0_8 = arith.constant 0 : index
    %c0_9 = arith.constant 0 : index
    %11 = vector.load %arg5[%c0_8, %c0_9] : memref<1x64xf32, #tpu.memory_space<vmem>>, vector<1x64xf32>
    %12 = vector.broadcast %11 : vector<1x64xf32> to vector<8x64xf32>
    %13 = arith.addf %10, %12 : vector<8x64xf32>
    %14 = arith.truncf %13 : vector<8x64xf32> to vector<8x64xbf16>
    %15 = math.tanh %14 : vector<8x64xbf16>
    %c0_10 = arith.constant 0 : index
    %c0_11 = arith.constant 0 : index
    %16 = vector.load %arg6[%c0_10, %c0_11] : memref<64x8xbf16, #tpu.memory_space<vmem>>, vector<64x8xbf16>
    %cst_12 = arith.constant dense<0.000000e+00> : vector<8x8xf32>
    %17 = tpu.matmul %15, %16, %cst_12 {dimension_numbers = #tpu.dot_dimension_numbers<[1], [0], [0], [1], [0, 0, 1, 1], [], []>} : vector<8x64xbf16>, vector<64x8xbf16>, vector<8x8xf32> -> vector<8x8xf32>
    %c0_13 = arith.constant 0 : index
    %c0_14 = arith.constant 0 : index
    %18 = vector.load %arg7[%c0_13, %c0_14] : memref<1x8xf32, #tpu.memory_space<vmem>>, vector<1x8xf32>
    %19 = vector.broadcast %18 : vector<1x8xf32> to vector<8x8xf32>
    %20 = arith.addf %17, %19 : vector<8x8xf32>
    %c0_15 = arith.constant 0 : index
    %c0_16 = arith.constant 0 : index
    %21 = vector.load %arg8[%c0_15, %c0_16] : memref<8x8xf32, #tpu.memory_space<vmem>>, vector<8x8xf32>
    tpu.vector_store %arg8[%c0_15, %c0_16], %20 {strides = array<i32>} : memref<8x8xf32, #tpu.memory_space<vmem>>, vector<8x8xf32>,
    return
  }
  func.func @transform_0(%arg0: i32) -> (i32, i32) {
    %c0_i32 = arith.constant 0 : i32
    %c0_i32_0 = arith.constant 0 : i32
    return %arg0, %c0_i32 : i32, i32
  }
  func.func @transform_1(%arg0: i32) -> (i32, i32) {
    %c0_i32 = arith.constant 0 : i32
    %c0_i32_0 = arith.constant 0 : i32
    %c0_i32_1 = arith.constant 0 : i32
    return %c0_i32, %c0_i32_0 : i32, i32
  }
  func.func @transform_2(%arg0: i32) -> (i32, i32) {
    %c0_i32 = arith.constant 0 : i32
    %c0_i32_0 = arith.constant 0 : i32
    %c0_i32_1 = arith.constant 0 : i32
    return %c0_i32, %c0_i32_0 : i32, i32
  }
  func.func @transform_3(%arg0: i32) -> (i32, i32) {
    %c0_i32 = arith.constant 0 : i32
    %c0_i32_0 = arith.constant 0 : i32
    %c0_i32_1 = arith.constant 0 : i32
    return %c0_i32, %c0_i32_0 : i32, i32
  }
  func.func @transform_4(%arg0: i32) -> (i32, i32) {
    %c0_i32 = arith.constant 0 : i32
    %c0_i32_0 = arith.constant 0 : i32
    %c0_i32_1 = arith.constant 0 : i32
    return %c0_i32, %c0_i32_0 : i32, i32
  }
  func.func @transform_5(%arg0: i32) -> (i32, i32) {
    %c0_i32 = arith.constant 0 : i32
    %c0_i32_0 = arith.constant 0 : i32
    %c0_i32_1 = arith.constant 0 : i32
    return %c0_i32, %c0_i32_0 : i32, i32
  }
  func.func @transform_6(%arg0: i32) -> (i32, i32) {
    %c0_i32 = arith.constant 0 : i32
    %c0_i32_0 = arith.constant 0 : i32
    %c0_i32_1 = arith.constant 0 : i32
    return %c0_i32, %c0_i32_0 : i32, i32
  }
  func.func @transform_7(%arg0: i32) -> (i32, i32) {
    %c0_i32 = arith.constant 0 : i32
    %c0_i32_0 = arith.constant 0 : i32
    return %arg0, %c0_i32 : i32, i32
  }
}

</mosaic_0001>

<bundles_post_ra>
// kernel: tpu_custom_call.1
= control target key start
LH: loop header
LB: loop body
LE: loop exit
PB: predicated region body
PF: predicated region fallthrough
CT: control target
= control target key end

     0   :  { %12 = vsyncpa [#allocation3], 0  ;;  %s521_s0 = inlined_call_operand.vmem [shape: f32[8,16], index: 0, kind: input, shape index: {}]   ;;  %s522_s1 = inlined_call_operand.hbm [shape: bf16[16,64], index: 1, kind: input, shape index: {}]   ;;  %s523_s2 = inlined_call_operand.vmem [shape: f32[1,64], index: 2, kind: input, shape index: {}]   ;;  %s524_s3 = inlined_call_operand.vmem [shape: bf16[64,64], index: 3, kind: input, shape index: {}]   ;;  %s525_s4 = inlined_call_operand.vmem [shape: f32[1,64], index: 4, kind: input, shape index: {}]   ;;  %s526_s5 = inlined_call_operand.vmem [shape: bf16[64,8], index: 5, kind: input, shape index: {}]   ;;  %s527_s6 = inlined_call_operand.vmem [shape: f32[1,8], index: 6, kind: input, shape index: {}]   ;;  %s528_s7 = inlined_call_operand.hbm [shape: f32[8,8], index: 7, kind: output, shape index: {}]  }
   0x1   :  { %13 = vsyncpa [#allocation4], 0  ;;  %s413_s24 = smov [#allocation2]   ;;  %s365_s28 = scalar_lea.hbm %s522_s1, 128 }
   0x2   :  { %s21_s25 = sshll.u32 %s413_s24, 4  ;;  %p366_p0 = scmp.ne.s32.totalorder %s522_s1, %s365_s28  ;;  %s22_s25 = int_to_ptr.vmem [resolvable:$true] %s21_s25 }
   0x3   :  { %p369_p1 = scmp.lt.u32.totalorder %s365_s28, %s522_s1 }
   0x5   :  { %p371_p2 = pnand %p369_p1, %p366_p0 }
   0x7   :  { %374 = shalt.err (!%p371_p2)
}
   0x8   :  { %s375_s10 = scalar_lea.vmem %s22_s25, 128  ;;  %p380_p4 = scmp.lt.s32.totalorder %s22_s25, %s22_s25 }
   0x9   :  { %p376_p3 = scmp.ne.s32.totalorder %s22_s25, %s375_s10  ;;  %p381_p5 = scmp.lt.s32.totalorder %s375_s10, %s375_s10 }
   0xb   :  { %p382_p6 = por %p381_p5, %p380_p4 }
   0xd   :  { %p383_p7 = pnand %p382_p6, %p376_p3 }
   0xf   :  { %386 = shalt.err (!%p383_p7)
}
  0x10   :  { %s414_s11 = smov 64   ;;  %s415_s12 = smov 4  }
  0x11   :  { %27 = dma.hbm_to_vmem [thread:$0]  %s522_s1, 128, %s22_s25, [#allocation3], %s414_s11, %s414_s11, %s415_s12  }
  0x12   :  { %409 = dma.done.wait [#allocation3], 128  }
  0x13   :  { %410 = vsyncadd [#allocation3], 4294967168  ;;  %v416_v0 = vmov 0.0   ;;  %vm417_vm0 = vmmov 0   ;;  %v352_v1 = vld [vmem:[#allocation2] sm:$0xff]   ;;  %vm59_vm1 = vcmask 130048  }
  0x14   :  { %316 = vmatprep.subr.bf16.mxu0 %v416_v0  ;;  %318 = vmatprep.mubr.msk.bf16.mxu0 %vm417_vm0, %v416_v0  ;;  %v42_v2 = vld [vmem:[%s521_s0] sm:$0xff]  ;;  %v354_v5 = vld [vmem:[%s524_s3 + $0x8] sm:$0xff]   ;;  %v355_v6 = vld [vmem:[%s524_s3 + $0x10] sm:$0xff]   ;;  %vm144_vm2 = vcmask 523264   ;;  %vm272_vm3 = vcmask 64512  }
  0x15   :  { %322 = vmatprep.subr.bf16.mxu1 %v416_v0  ;;  %330 = vmatprep.mubr.msk.bf16.mxu1 %vm417_vm0, %v416_v0  ;;  %v43_v3 = vpack.c.bf16 %v42_v2, %v42_v2  ;;  %v353_v4 = vld [vmem:[%s524_s3] sm:$0xff]   ;;  %v356_v7 = vld [vmem:[%s524_s3 + $0x18] sm:$0xff]   ;;  %v358_v17 = vld [vmem:[%s526_s5 + $0x8] sm:$0xff]  }
  0x16   :  { %317 = vmatpush3.bf16.msra.mxu0 %v352_v1  ;;  %323 = vmatpush3.bf16.msra.mxu1 %v353_v4  ;;  %v289_v8 = vld [vmem:[%s523_s2] ss:$0 sm:$0xff]  ;;  %v359_v18 = vld [vmem:[%s526_s5 + $0x10] sm:$0xff]   ;;  %v360_v19 = vld [vmem:[%s526_s5 + $0x18] sm:$0xff]  }
  0x17   :  { %334 = vmatprep.subr.bf16.mxu0 %v416_v0  ;;  %324 = vmatprep.subr.bf16.mxu1 %v416_v0  ;;  %v357_v16 = vld [vmem:[%s526_s5] sm:$0xff]   ;;  %s418_s5 = smov [#allocation5]  }
  0x18   :  { %v292_v20 = vld [vmem:[%s525_s4] ss:$0 sm:$0xff]  ;;  %s280_s12 = sshll.u32 %s418_s5, 4  ;;  %s281_s12 = int_to_ptr.vmem [resolvable:$true] %s280_s12 }
  0x19   :  { %319 = vmatmul.mubr.msk.bf16.vlgmr.msra.gmra.mrb[0].mxu0 %vm59_vm1, %v43_v3  ;;  %v298_v28 = vld [vmem:[%s527_s6] ss:$0 sm:$0xff]  ;;  %s387_s4 = scalar_lea.vmem %s281_s12, 128  ;;  %p392_p9 = scmp.lt.s32.totalorder %s281_s12, %s281_s12 }
  0x1a   :  { %342 = vmatprep.mubr.msk.bf16.mxu0 %vm417_vm0, %v416_v0  ;;  %325 = vmatpush3.bf16.msra.mxu1 %v354_v5  ;;  %p388_p8 = scmp.ne.s32.totalorder %s281_s12, %s387_s4  ;;  %p393_p10 = scmp.lt.s32.totalorder %s387_s4, %s387_s4 }
  0x1b   :  { %326 = vmatprep.subr.bf16.mxu1 %v416_v0  ;;  %335 = vmatpush3.bf16.msra.mxu0 %v357_v16 }
  0x1c   :  { %336 = vmatprep.subr.bf16.mxu0 %v416_v0  ;;  %p394_p11 = por %p393_p10, %p392_p9 }
  0x1e   :  { %327 = vmatpush3.bf16.msra.mxu1 %v355_v6  ;;  %p395_p12 = pnand %p394_p11, %p388_p8 }
  0x1f   :  { %328 = vmatprep.subr.bf16.mxu1 %v416_v0  ;;  %337 = vmatpush3.bf16.msra.mxu0 %v358_v17 }
  0x20   :  { %338 = vmatprep.subr.bf16.mxu0 %v416_v0 }
  0x22   :  { %329 = vmatpush3.bf16.msra.mxu1 %v356_v7 }
  0x23   :  { %339 = vmatpush3.bf16.msra.mxu0 %v359_v18 }
  0x24   :  { %340 = vmatprep.subr.bf16.mxu0 %v416_v0 }
  0x27   :  { %341 = vmatpush3.bf16.msra.mxu0 %v360_v19 }
  0xec   :  { %v97_v9 = vpop.f32.mrb[0].mxu0 }
  0xed   :  { %v98_v10 = vadd.f32 %v289_v8, %v97_v9  ;;  %v320_v11 = vpop.f32.mrb[1].mxu0 }
  0xee   :  { %v100_v12 = vpop.f32.mrb[2].mxu0 }
  0xef   :  { %v103_v13 = vpack.c.bf16 %v98_v10, %v98_v10  ;;  %v321_v14 = vpop.f32.mrb[3].mxu0 }
  0xf1   :  { %361 = vtanh.bf16 %v103_v13 }
  0xfc   :  { %v362_v15 = vpop.eup %361 }
  0xfd   :  { %331 = vmatmul.mubr.msk.bf16.vlgmr.msra.gmra.mrb[0].mxu1 %vm144_vm2, %v362_v15 }
 0x1d0   :  { %v182_v21 = vpop.f32.mrb[0].mxu1 }
 0x1d1   :  { %v183_v22 = vadd.f32 %v292_v20, %v182_v21  ;;  %v332_v23 = vpop.f32.mrb[1].mxu1 }
 0x1d2   :  { %v185_v24 = vpop.f32.mrb[2].mxu1 }
 0x1d3   :  { %v188_v25 = vpack.c.bf16 %v183_v22, %v183_v22  ;;  %v333_v26 = vpop.f32.mrb[3].mxu1 }
 0x1d5   :  { %363 = vtanh.bf16 %v188_v25 }
 0x1e0   :  { %v364_v27 = vpop.eup %363 }
 0x1e1   :  { %343 = vmatmul.mubr.msk.bf16.vlgmr.msra.gmra.mrb[4].mxu0 %vm144_vm2, %v364_v27 }
 0x2b4   :  { %v266_v29 = vpop.f32.mrb[4].mxu0 }
 0x2b5   :  { %v267_v30 = vadd.f32 %v298_v28, %v266_v29  ;;  %v344_v31 = vpop.f32.mrb[5].mxu0 }
 0x2b6   :  { %v269_v32 = vpop.f32.mrb[6].mxu0 }
 0x2b7   :  { %v345_v33 = vpop.f32.mrb[7].mxu0  ;;  %273 = vst.msk [vmem:[#allocation5] sm:$0xff] %vm272_vm3, %v267_v30 }
 0x2b8   :  { %398 = shalt.err (!%p395_p12)
}
 0x2b9   :  { %s399_s6 = scalar_lea.hbm %s528_s7, 128 }
 0x2ba   :  { %p400_p13 = scmp.ne.s32.totalorder %s528_s7, %s399_s6  ;;  %p403_p0 = scmp.lt.u32.totalorder %s399_s6, %s528_s7 }
 0x2bc   :  { %p405_p1 = pnand %p403_p0, %p400_p13 }
 0x2be   :  { %408 = shalt.err (!%p405_p1)
}
 0x2bf   :  { %283 = dma.vmem_to_hbm [thread:$0]  %s281_s12, 128, %s528_s7, [#allocation4]  }
 0x2c0   :  { %411 = dma.done.wait [#allocation4], 128  }
 0x2c1   :  { %412 = vsyncadd [#allocation4], 4294967168 }
 0x2c2   :  { %287 = vsyncpa [#allocation3], 1 }
 0x2c3   :  { %288 = vsyncpa [#allocation4], 1 }

</bundles_post_ra>
